<compile_context>
chip_gen: v7x
topology: tpu7x:2x2x1
jax: 0.10.0
libtpu: 0.0.40
codegen_flags: <defaults>
</compile_context>

<pallas_src>
import functools

import jax
import jax.numpy as jnp
from jax.experimental import pallas as pl
from jax.experimental.pallas import tpu as pltpu


def _round_up(x, m):
    return ((x + m - 1) // m) * m


def _cbr_kernel(x2_ref, w2_ref, gamma_ref, beta_ref, o_ref, *,
                eps, activate, n_batch, p_real, per_image_out):
    """Fused conv-as-GEMM + BatchNorm2d (training-mode forward) + optional ReLU.

    x2_ref   : (Kp, NPp)    im2col patches (zero-padded), compute dtype (bf16)
    w2_ref   : (co_t, Kp)   repacked conv weight tile for this CO grid step
    gamma_ref: (co_t, 1)    BN scale (f32)
    beta_ref : (co_t, 1)    BN shift (f32)
    o_ref    : (N, co_t, P)   if per_image_out (P % 128 == 0 -> 128-aligned lane slices)
               (co_t, NPp)    otherwise        (single full-width store)
    """
    inv_count = 1.0 / float(n_batch * p_real)

    # ---- convolution: ONE MXU matmul for the whole batch ----
    conv = jnp.dot(w2_ref[...], x2_ref[...],
                   preferred_element_type=jnp.float32)            # (co_t, NPp) f32

    # ---- BatchNorm2d (training-mode) statistics, per channel over N*P ----
    # Zero-padded lanes/rows contribute exactly 0 to both sums; divide by the REAL count.
    ch_sum = conv.sum(axis=1, keepdims=True)                      # (co_t, 1)
    ch_sqsum = (conv * conv).sum(axis=1, keepdims=True)           # (co_t, 1)
    mean = ch_sum * inv_count
    var = jnp.maximum(ch_sqsum * inv_count - mean * mean, 0.0)    # biased var (train mode)

    scale = jax.lax.rsqrt(var + eps) * gamma_ref[...]             # (co_t, 1)
    bias = beta_ref[...] - mean * scale                           # mean folded into affine

    y = conv * scale + bias
    if activate:
        y = jnp.maximum(y, 0.0)
    y = y.astype(o_ref.dtype)

    if per_image_out:
        # P % 128 == 0: each per-image slice is 128-aligned / whole vregs -> unmasked stores.
        for n in range(n_batch):                                  # tiny, store-only unroll
            o_ref[n] = y[:, n * p_real:(n + 1) * p_real]
    else:
        o_ref[...] = y                                            # full-width unmasked store


def basic_block_forward(x_nchw, w_oihw, gamma, beta, *,
                        stride=1, padding=0, dilation=1,
                        activate=False, eps=1e-5,
                        compute_dtype=jnp.bfloat16):
    """Pallas implementation of BasicBlock.forward: conv -> BN(train) -> [ReLU]."""
    N, CI, H, W = x_nchw.shape
    CO, CI2, KH, KW = w_oihw.shape
    assert CI == CI2

    HO = (H + 2 * padding - dilation * (KH - 1) - 1) // stride + 1
    WO = (W + 2 * padding - dilation * (KW - 1) - 1) // stride + 1
    P = HO * WO
    NP = N * P
    K = KH * KW * CI

    itemsize = jnp.dtype(compute_dtype).itemsize
    Kp = _round_up(K, 32 // itemsize)          # sublane multiple for the compute dtype
    NPp = _round_up(NP, 128)                   # lane multiple

    # ---- layout plumbing (plain JAX): im2col patches + repacked weight ----
    # TODO(synk): this still materializes a KH*KW-inflated patch tensor in HBM; production
    #             shapes should build patches in-kernel from a halo-tiled input DMA.
    xp = jnp.pad(x_nchw, ((0, 0), (0, 0), (padding, padding), (padding, padding)))
    slabs = []
    for kh in range(KH):
        for kw in range(KW):
            h0 = kh * dilation
            w0 = kw * dilation
            slabs.append(
                xp[:, :,
                   h0:h0 + (HO - 1) * stride + 1:stride,
                   w0:w0 + (WO - 1) * stride + 1:stride])          # (N, CI, HO, WO)
    # (N, KH*KW*CI, P) -> (K, N, P) -> (K, N*P); K index = (kh*KW + kw)*CI + ci.
    x2 = jnp.stack(slabs, axis=1).reshape(N, K, P).transpose(1, 0, 2).reshape(K, NP)
    x2 = jnp.pad(x2, ((0, Kp - K), (0, NPp - NP))).astype(compute_dtype)

    # OIHW -> (CO, KH, KW, CI) -> (CO, K); K ordering matches x2.
    w2 = jnp.transpose(w_oihw, (0, 2, 3, 1)).reshape(CO, K)
    w2 = jnp.pad(w2, ((0, 0), (0, Kp - K))).astype(compute_dtype)

    gamma2 = gamma.reshape(CO, 1).astype(jnp.float32)
    beta2 = beta.reshape(CO, 1).astype(jnp.float32)

    # ---- grid over CO tiles (per-channel BN stats -> tiles are fully independent) ----
    co_tile = CO if CO <= 256 else 256
    assert CO % co_tile == 0, "TODO(synk): pad CO for non-divisible channel counts"
    grid = (CO // co_tile,)

    per_image_out = (P % 128 == 0)
    if per_image_out:
        out_shape = jax.ShapeDtypeStruct((N, CO, P), x_nchw.dtype)
        out_spec = pl.BlockSpec((N, co_tile, P), lambda j: (0, j, 0))
    else:
        out_shape = jax.ShapeDtypeStruct((CO, NPp), x_nchw.dtype)
        out_spec = pl.BlockSpec((co_tile, NPp), lambda j: (j, 0))

    kernel = functools.partial(_cbr_kernel, eps=eps, activate=activate,
                               n_batch=N, p_real=P, per_image_out=per_image_out)

    # Explicit scoped-VMEM budget from the actual buffers: resident activations,
    # double-buffered weight/param/output tiles, f32 conv + affine temporaries.
    out_itemsize = jnp.dtype(x_nchw.dtype).itemsize
    est = (Kp * NPp * itemsize                       # x2 (VMEM-resident, fetched once)
           + 2 * co_tile * Kp * itemsize             # w2 tile (double-buffered)
           + 4 * co_tile * 4 * 2                     # gamma / beta tiles
           + 2 * co_tile * NPp * out_itemsize        # output tile (double-buffered)
           + 3 * co_tile * NPp * 4)                  # f32 conv / y temporaries
    vmem_limit = int(min(64 * 1024 * 1024, max(16 * 1024 * 1024, 2 * est)))

    out = pl.pallas_call(
        kernel,
        out_shape=out_shape,
        grid=grid,
        in_specs=[
            pl.BlockSpec((Kp, NPp), lambda j: (0, 0)),       # activations: constant block ->
                                                             #   stays VMEM-resident
            pl.BlockSpec((co_tile, Kp), lambda j: (j, 0)),   # weight tile streams over CO
            pl.BlockSpec((co_tile, 1), lambda j: (j, 0)),    # BN gamma tile
            pl.BlockSpec((co_tile, 1), lambda j: (j, 0)),    # BN beta tile
        ],
        out_specs=out_spec,
        compiler_params=pltpu.CompilerParams(
            dimension_semantics=("parallel",),               # CO tiles independent (v7x cores)
            vmem_limit_bytes=vmem_limit),
    )(x2, w2, gamma2, beta2)

    if per_image_out:
        return out.reshape(N, CO, HO, WO)
    # Channel-major (CO, N*P) slab -> NCHW; cheap wrapper-side layout fix for small P.
    return out[:, :NP].reshape(CO, N, HO, WO).transpose(1, 0, 2, 3)


def _reference(x, w, gamma, beta, *, stride, padding, dilation, activate, eps,
               compute_dtype):
    """Pure-JAX reference: nn.Conv2d + nn.BatchNorm2d(train) + optional ReLU,
    with the same matmul operand dtype as the kernel (accumulation in f32)."""
    conv = jax.lax.conv_general_dilated(
        x.astype(compute_dtype), w.astype(compute_dtype),
        window_strides=(stride, stride),
        padding=((padding, padding), (padding, padding)),
        rhs_dilation=(dilation, dilation),
        dimension_numbers=("NCHW", "OIHW", "NCHW"),
        preferred_element_type=jnp.float32)
    mean = jnp.mean(conv, axis=(0, 2, 3), keepdims=True)
    var = jnp.mean((conv - mean) ** 2, axis=(0, 2, 3), keepdims=True)
    y = (conv - mean) * jax.lax.rsqrt(var + eps)
    y = y * gamma.reshape(1, -1, 1, 1) + beta.reshape(1, -1, 1, 1)
    if activate:
        y = jnp.maximum(y, 0.0)
    return y.astype(x.dtype)


if __name__ == "__main__":
    # BasicBlock(in_planes=4, out_planes=8, kernel_size=3, padding=1, bias=False, ...)
    N, CI, H, W = 2, 4, 16, 16
    CO, KS = 8, 3

    key = jax.random.PRNGKey(0)
    kx, kw, kg, kb = jax.random.split(key, 4)
    x = jax.random.normal(kx, (N, CI, H, W), dtype=jnp.float32)
    w = 0.1 * jax.random.normal(kw, (CO, CI, KS, KS), dtype=jnp.float32)    # Conv2d weight
    gamma = 1.0 + 0.1 * jax.random.normal(kg, (CO,), dtype=jnp.float32)     # BN weight
    beta = 0.1 * jax.random.normal(kb, (CO,), dtype=jnp.float32)            # BN bias

    configs = [
        dict(stride=1, padding=1, dilation=1, activate=True),    # main config: HO*WO = 256
        dict(stride=2, padding=1, dilation=1, activate=False),   # small-P / stride support
    ]
    for cfg in configs:
        out = basic_block_forward(x, w, gamma, beta, eps=1e-5, **cfg)
        out = jax.block_until_ready(out)
        ref = _reference(x, w, gamma, beta, eps=1e-5,
                         compute_dtype=jnp.bfloat16, **cfg)
        assert out.shape == ref.shape, (out.shape, ref.shape)
        err = float(jnp.max(jnp.abs(out - ref)))
        assert err < 2e-3, (cfg, err)

    print("KERNEL_OK")
</pallas_src>

<mosaic_0001>
module attributes {stable_mosaic.version = 11 : i64} {
  func.func @_cbr_kernel(%arg0: i32, %arg1: memref<48x512xbf16, #tpu.memory_space<vmem>>, %arg2: memref<8x48xbf16, #tpu.memory_space<vmem>>, %arg3: memref<8x1xf32, #tpu.memory_space<vmem>>, %arg4: memref<8x1xf32, #tpu.memory_space<vmem>>, %arg5: memref<2x8x256xf32, #tpu.memory_space<vmem>>) attributes {dimension_semantics = [#tpu.dimension_semantics<parallel>], iteration_bounds = array<i64: 1>, scalar_prefetch = 0 : i64, scratch_operands = 0 : i64, tpu.core_type = #tpu.core_type<tc>, window_params = [{pipeline_mode = #tpu.pipeline_mode<synchronous>, transform_indices = @transform_0, window_bounds = array<i64: 48, 512>}, {transform_indices = @transform_1, window_bounds = array<i64: 8, 48>}, {transform_indices = @transform_2, window_bounds = array<i64: 8, 1>}, {transform_indices = @transform_3, window_bounds = array<i64: 8, 1>}, {transform_indices = @transform_4, window_bounds = array<i64: 2, 8, 256>}]} {
    %c0 = arith.constant 0 : index
    %c0_0 = arith.constant 0 : index
    %0 = vector.load %arg2[%c0, %c0_0] : memref<8x48xbf16, #tpu.memory_space<vmem>>, vector<8x48xbf16>
    %c0_1 = arith.constant 0 : index
    %c0_2 = arith.constant 0 : index
    %1 = vector.load %arg1[%c0_1, %c0_2] : memref<48x512xbf16, #tpu.memory_space<vmem>>, vector<48x512xbf16>
    %cst = arith.constant dense<0.000000e+00> : vector<8x512xf32>
    %2 = tpu.matmul %0, %1, %cst {dimension_numbers = #tpu.dot_dimension_numbers<[1], [0], [0], [1], [0, 0, 1, 1], [], []>} : vector<8x48xbf16>, vector<48x512xbf16>, vector<8x512xf32> -> vector<8x512xf32>
    %cst_3 = arith.constant dense<0.000000e+00> : vector<8xf32>
    %3 = vector.multi_reduction <add>, %2, %cst_3 [1] : vector<8x512xf32> to vector<8xf32>
    %4 = vector.shape_cast %3 : vector<8xf32> to vector<8x1xf32>
    %5 = arith.mulf %2, %2 : vector<8x512xf32>
    %cst_4 = arith.constant dense<0.000000e+00> : vector<8xf32>
    %6 = vector.multi_reduction <add>, %5, %cst_4 [1] : vector<8x512xf32> to vector<8xf32>
    %7 = vector.shape_cast %6 : vector<8xf32> to vector<8x1xf32>
    %cst_5 = arith.constant 0.001953125 : f32
    %8 = vector.broadcast %cst_5 : f32 to vector<8x1xf32>
    %9 = arith.mulf %4, %8 : vector<8x1xf32>
    %cst_6 = arith.constant 0.001953125 : f32
    %10 = vector.broadcast %cst_6 : f32 to vector<8x1xf32>
    %11 = arith.mulf %7, %10 : vector<8x1xf32>
    %12 = arith.mulf %9, %9 : vector<8x1xf32>
    %13 = arith.subf %11, %12 : vector<8x1xf32>
    %cst_7 = arith.constant 0.000000e+00 : f32
    %14 = vector.broadcast %cst_7 : f32 to vector<8x1xf32>
    %15 = arith.maximumf %13, %14 : vector<8x1xf32>
    %cst_8 = arith.constant 9.99999974E-6 : f32
    %16 = vector.broadcast %cst_8 : f32 to vector<8x1xf32>
    %17 = arith.addf %15, %16 : vector<8x1xf32>
    %18 = math.rsqrt %17 : vector<8x1xf32>
    %c0_9 = arith.constant 0 : index
    %c0_10 = arith.constant 0 : index
    %19 = vector.load %arg3[%c0_9, %c0_10] : memref<8x1xf32, #tpu.memory_space<vmem>>, vector<8x1xf32>
    %20 = arith.mulf %18, %19 : vector<8x1xf32>
    %c0_11 = arith.constant 0 : index
    %c0_12 = arith.constant 0 : index
    %21 = vector.load %arg4[%c0_11, %c0_12] : memref<8x1xf32, #tpu.memory_space<vmem>>, vector<8x1xf32>
    %22 = arith.mulf %9, %20 : vector<8x1xf32>
    %23 = arith.subf %21, %22 : vector<8x1xf32>
    %24 = vector.broadcast %20 : vector<8x1xf32> to vector<8x512xf32>
    %25 = arith.mulf %2, %24 : vector<8x512xf32>
    %26 = vector.broadcast %23 : vector<8x1xf32> to vector<8x512xf32>
    %27 = arith.addf %25, %26 : vector<8x512xf32>
    %cst_13 = arith.constant 0.000000e+00 : f32
    %28 = vector.broadcast %cst_13 : f32 to vector<8x512xf32>
    %29 = arith.maximumf %27, %28 : vector<8x512xf32>
    %30 = vector.extract_strided_slice %29 {offsets = [0, 0], sizes = [8, 256], strides = [1, 1]} : vector<8x512xf32> to vector<8x256xf32>
    %c0_14 = arith.constant 0 : index
    %c0_15 = arith.constant 0 : index
    %c0_16 = arith.constant 0 : index
    %31 = vector.load %arg5[%c0_14, %c0_15, %c0_16] : memref<2x8x256xf32, #tpu.memory_space<vmem>>, vector<1x8x256xf32>
    %32 = vector.shape_cast %31 : vector<1x8x256xf32> to vector<8x256xf32>
    %33 = vector.shape_cast %30 : vector<8x256xf32> to vector<1x8x256xf32>
    tpu.vector_store %arg5[%c0_14, %c0_15, %c0_16], %33 {strides = array<i32>} : memref<2x8x256xf32, #tpu.memory_space<vmem>>, vector<1x8x256xf32>,
    %34 = vector.extract_strided_slice %29 {offsets = [0, 256], sizes = [8, 256], strides = [1, 1]} : vector<8x512xf32> to vector<8x256xf32>
    %c1 = arith.constant 1 : index
    %c0_17 = arith.constant 0 : index
    %c0_18 = arith.constant 0 : index
    %35 = vector.load %arg5[%c1, %c0_17, %c0_18] : memref<2x8x256xf32, #tpu.memory_space<vmem>>, vector<1x8x256xf32>
    %36 = vector.shape_cast %35 : vector<1x8x256xf32> to vector<8x256xf32>
    %37 = vector.shape_cast %34 : vector<8x256xf32> to vector<1x8x256xf32>
    tpu.vector_store %arg5[%c1, %c0_17, %c0_18], %37 {strides = array<i32>} : memref<2x8x256xf32, #tpu.memory_space<vmem>>, vector<1x8x256xf32>,
    return
  }
  func.func @transform_0(%arg0: i32) -> (i32, i32) {
    %c0_i32 = arith.constant 0 : i32
    %c0_i32_0 = arith.constant 0 : i32
    %c0_i32_1 = arith.constant 0 : i32
    return %c0_i32, %c0_i32_0 : i32, i32
  }
  func.func @transform_1(%arg0: i32) -> (i32, i32) {
    %c0_i32 = arith.constant 0 : i32
    %c0_i32_0 = arith.constant 0 : i32
    return %arg0, %c0_i32 : i32, i32
  }
  func.func @transform_2(%arg0: i32) -> (i32, i32) {
    %c0_i32 = arith.constant 0 : i32
    %c0_i32_0 = arith.constant 0 : i32
    return %arg0, %c0_i32 : i32, i32
  }
  func.func @transform_3(%arg0: i32) -> (i32, i32) {
    %c0_i32 = arith.constant 0 : i32
    %c0_i32_0 = arith.constant 0 : i32
    return %arg0, %c0_i32 : i32, i32
  }
  func.func @transform_4(%arg0: i32) -> (i32, i32, i32) {
    %c0_i32 = arith.constant 0 : i32
    %c0_i32_0 = arith.constant 0 : i32
    %c0_i32_1 = arith.constant 0 : i32
    return %c0_i32, %arg0, %c0_i32_0 : i32, i32, i32
  }
}

</mosaic_0001>

<bundles_post_ra>
// kernel: tpu_custom_call.1
= control target key start
LH: loop header
LB: loop body
LE: loop exit
PB: predicated region body
PF: predicated region fallthrough
CT: control target
= control target key end

     0   :  { %9 = vsyncpa [#allocation3], 0  ;;  %s420_s0 = inlined_call_operand.hbm [shape: bf16[48,512], index: 0, kind: input, shape index: {}]   ;;  %s421_s1 = inlined_call_operand.vmem [shape: bf16[8,48], index: 1, kind: input, shape index: {}]   ;;  %s422_s2 = inlined_call_operand.vmem [shape: f32[8,1], index: 2, kind: input, shape index: {}]   ;;  %s423_s3 = inlined_call_operand.vmem [shape: f32[8,1], index: 3, kind: input, shape index: {}]   ;;  %s424_s4 = inlined_call_operand.hbm [shape: f32[2,8,256], index: 4, kind: output, shape index: {}]  }
   0x1   :  { %10 = vsyncpa [#allocation4], 0  ;;  %s351_s15 = smov [#allocation2]   ;;  %s303_s19 = scalar_lea.hbm %s420_s0, 1536 }
   0x2   :  { %s16_s16 = sshll.u32 %s351_s15, 4  ;;  %p304_p0 = scmp.ne.s32.totalorder %s420_s0, %s303_s19  ;;  %s17_s16 = int_to_ptr.vmem [resolvable:$true] %s16_s16 }
   0x3   :  { %p307_p1 = scmp.lt.u32.totalorder %s303_s19, %s420_s0 }
   0x5   :  { %p309_p2 = pnand %p307_p1, %p304_p0 }
   0x7   :  { %312 = shalt.err (!%p309_p2)
}
   0x8   :  { %s313_s24 = scalar_lea.vmem %s17_s16, 1536  ;;  %p318_p4 = scmp.lt.s32.totalorder %s17_s16, %s17_s16 }
   0x9   :  { %p314_p3 = scmp.ne.s32.totalorder %s17_s16, %s313_s24  ;;  %p319_p5 = scmp.lt.s32.totalorder %s313_s24, %s313_s24 }
   0xb   :  { %p320_p6 = por %p319_p5, %p318_p4 }
   0xd   :  { %p321_p7 = pnand %p320_p6, %p314_p3 }
   0xf   :  { %324 = shalt.err (!%p321_p7)
}
  0x10   :  { %s352_s25 = smov 256   ;;  %s353_s26 = smov 16  }
  0x11   :  { %22 = dma.hbm_to_vmem [thread:$0]  %s420_s0, 1536, %s17_s16, [#allocation3], %s352_s25, %s352_s25, %s353_s26  }
  0x12   :  { %347 = dma.done.wait [#allocation3], 1536  }
  0x13   :  { %348 = vsyncadd [#allocation3], 4294965760  ;;  %v354_v0 = vmov 0   ;;  %v283_v1 = vld [vmem:[#allocation2 + $0x4] ss:$16 sps:$4 sm:$0xff]   ;;  %vm106_vm0 = vcmask 392192  }
  0x14   :  { %142 = vmatprep.mubr.bf16.mxu0 %v354_v0  ;;  %183 = vmatprep.mubr.bf16.mxu1 %v354_v0  ;;  %v285_v2 = vld [vmem:[#allocation2 + $0xc] ss:$16 sps:$4 sm:$0xff]   ;;  %v287_v3 = vld [vmem:[#allocation2] ss:$16 sps:$4 sm:$0xff]   ;;  %v288_v4 = vld [vmem:[#allocation2 + $0x8] ss:$16 sps:$4 sm:$0xff]  }
  0x15   :  { %281 = vset.pattern.permute.xlu1 %v354_v0  ;;  %282 = vset.pattern.permute.xlu0 %v354_v0  ;;  %v289_v5 = vld [vmem:[#allocation2 + $0x24] ss:$16 sps:$4 sm:$0xff]   ;;  %v291_v6 = vld [vmem:[#allocation2 + $0x2c] ss:$16 sps:$4 sm:$0xff]   ;;  %v293_v7 = vld [vmem:[#allocation2 + $0x20] ss:$16 sps:$4 sm:$0xff]  }
  0x16   :  { %110 = vmatprep.subr.bf16.mxu0 %v283_v1  ;;  %151 = vmatprep.subr.bf16.mxu1 %v285_v2  ;;  %v294_v8 = vld [vmem:[#allocation2 + $0x28] ss:$16 sps:$4 sm:$0xff]   ;;  %v295_v9 = vld [vmem:[#allocation2 + $0x44] ss:$16 sps:$4 sm:$0xff]   ;;  %v297_v10 = vld [vmem:[#allocation2 + $0x4c] ss:$16 sps:$4 sm:$0xff]  }
  0x17   :  { %111 = vmatpush1.bf16.msra.mxu0 %v287_v3  ;;  %152 = vmatpush1.bf16.msra.mxu1 %v288_v4  ;;  %v299_v11 = vld [vmem:[#allocation2 + $0x40] ss:$16 sps:$4 sm:$0xff]   ;;  %v300_v12 = vld [vmem:[#allocation2 + $0x48] ss:$16 sps:$4 sm:$0xff]   ;;  %s355_s7 = smov [#allocation5]  }
  0x18   :  { %112 = vmatprep.subr.bf16.mxu0 %v289_v5  ;;  %153 = vmatprep.subr.bf16.mxu1 %v291_v6  ;;  %v33_v13 = vld [vmem:[%s421_s1] sm:$0xf]  ;;  %s250_s8 = sshll.u32 %s355_s7, 4  ;;  %s251_s8 = int_to_ptr.vmem [resolvable:$true] %s250_s8 }
  0x19   :  { %v213_v40 = vld [vmem:[%s422_s2] sm:$0xff]  ;;  %s325_s2 = scalar_lea.vmem %s251_s8, 512  ;;  %p330_p9 = scmp.lt.s32.totalorder %s251_s8, %s251_s8 }
  0x1a   :  { %v215_v43 = vld [vmem:[%s423_s3] sm:$0xff]  ;;  %p326_p8 = scmp.ne.s32.totalorder %s251_s8, %s325_s2  ;;  %p331_p10 = scmp.lt.s32.totalorder %s325_s2, %s325_s2 }
  0x1b   :  { %113 = vmatpush1.bf16.msra.mxu0 %v293_v7  ;;  %154 = vmatpush1.bf16.msra.mxu1 %v294_v8 }
  0x1c   :  { %114 = vmatprep.subr.bf16.mxu0 %v295_v9  ;;  %155 = vmatprep.subr.bf16.mxu1 %v297_v10  ;;  %p332_p11 = por %p331_p10, %p330_p9 }
  0x1e   :  { %p333_p12 = pnand %p332_p11, %p326_p8 }
  0x1f   :  { %115 = vmatpush1.bf16.msra.mxu0 %v299_v11  ;;  %156 = vmatpush1.bf16.msra.mxu1 %v300_v12 }
  0x22   :  { %274 = vmatmul.mubr.msk.bf16.vlgmr.msra.gmra.mrb[0].mxu0 %vm106_vm0, %v33_v13  ;;  %275 = vmatmul.mubr.msk.bf16.vlgmr.msra.gmra.mrb[0].mxu1 %vm106_vm0, %v33_v13 }
  0xf5   :  { %v144_v14 = vpop.f32.mrb[0].mxu0  ;;  %v185_v15 = vpop.f32.mrb[0].mxu1 }
  0xf6   :  { %v197_v16 = vmul.f32 %v144_v14, %v144_v14  ;;  %v146_v17 = vpop.f32.mrb[1].mxu0  ;;  %v187_v18 = vpop.f32.mrb[1].mxu1  ;;  %v199_v19 = vmul.f32 %v185_v15, %v185_v15 }
  0xf7   :  { %v192_v20 = vadd.f32 %v146_v17, %v144_v14  ;;  %v198_v21 = vmul.f32 %v146_v17, %v146_v17  ;;  %v148_v22 = vpop.f32.mrb[2].mxu0  ;;  %v189_v23 = vpop.f32.mrb[2].mxu1  ;;  %v200_v29 = vmul.f32 %v187_v18, %v187_v18 }
  0xf8   :  { %v149_v24 = vpop.f32.mrb[3].mxu0  ;;  %v190_v25 = vpop.f32.mrb[3].mxu1 }
  0xf9   :  { %v193_v26 = vadd.f32 %v192_v20, %v185_v15  ;;  %v201_v27 = vadd.f32 %v198_v21, %v197_v16 }
  0xfb   :  { %v194_v28 = vadd.f32 %v193_v26, %v187_v18  ;;  %v202_v30 = vadd.f32 %v201_v27, %v199_v19 }
  0xfd   :  { %195 = vadd.xlane.f32.xlu0 %v194_v28  ;;  %v203_v31 = vadd.f32 %v202_v30, %v200_v29 }
 0x101   :  { %204 = vadd.xlane.f32.xlu0 %v203_v31 }
 0x18a   :  { %v196_v32 = vpop.xlane.xlu0 %195 }
 0x18b   :  { %v206_v33 = vmul.f32 0.001953125, %v196_v32 }
 0x18d   :  { %v208_v35 = vmul.f32 %v206_v33, %v206_v33 }
 0x18e   :  { %v205_v34 = vpop.xlane.xlu0 %204 }
 0x18f   :  { %v207_v36 = vmul.f32 0.001953125, %v205_v34 }
 0x191   :  { %v209_v37 = vsub.f32 %v207_v36, %v208_v35 }
 0x193   :  { %v210_v38 = vmax.f32 %v209_v37, 0.0 }
 0x195   :  { %v211_v39 = vadd.f32 1e-05, %v210_v38 }
 0x197   :  { %301 = vrsqrt.f32 %v211_v39 }
 0x1a1   :  { %v302_v41 = vpop.eup %301 }
 0x1a2   :  { %v214_v42 = vmul.f32 %v302_v41, %v213_v40 }
 0x1a4   :  { %220 = vperm.xlu1 %281, %v214_v42   ;;  %v216_v44 = vmul.f32 %v214_v42, %v206_v33 }
 0x1a6   :  { %v217_v45 = vsub.f32 %v215_v43, %v216_v44 }
 0x1a8   :  { %229 = vperm.xlu1 %281, %v217_v45  }
 0x223   :  { %v221_v46 = vpop.permute.xlu1 %220 }
 0x224   :  { %v223_v47 = vmul.f32 %v221_v46, %v144_v14  ;;  %v224_v48 = vmul.f32 %v221_v46, %v146_v17  ;;  %v225_v49 = vmul.f32 %v221_v46, %v185_v15  ;;  %v226_v50 = vmul.f32 %v221_v46, %v187_v18 }
 0x227   :  { %v230_v51 = vpop.permute.xlu1 %229 }
 0x228   :  { %v232_v52 = vadd.f32 %v230_v51, %v223_v47  ;;  %v233_v53 = vadd.f32 %v230_v51, %v224_v48  ;;  %v234_v54 = vadd.f32 %v230_v51, %v225_v49  ;;  %v235_v55 = vadd.f32 %v230_v51, %v226_v50 }
 0x22a   :  { %v236_v56 = vmax.f32 %v232_v52, 0.0  ;;  %v237_v57 = vmax.f32 %v233_v53, 0.0  ;;  %v238_v58 = vmax.f32 %v234_v54, 0.0  ;;  %v239_v59 = vmax.f32 %v235_v55, 0.0 }
 0x22c   :  { %240 = vst [vmem:[#allocation5] sm:$0xff] %v236_v56  ;;  %241 = vst [vmem:[#allocation5 + $0x8] sm:$0xff] %v237_v57 }
 0x22d   :  { %243 = vst [vmem:[#allocation5 + $0x10] sm:$0xff] %v238_v58  ;;  %244 = vst [vmem:[#allocation5 + $0x18] sm:$0xff] %v239_v59 }
 0x22e   :  { %336 = shalt.err (!%p333_p12)
}
 0x22f   :  { %s337_s10 = scalar_lea.hbm %s424_s4, 512 }
 0x230   :  { %p338_p13 = scmp.ne.s32.totalorder %s424_s4, %s337_s10  ;;  %p341_p0 = scmp.lt.u32.totalorder %s337_s10, %s424_s4 }
 0x232   :  { %p343_p1 = pnand %p341_p0, %p338_p13 }
 0x234   :  { %346 = shalt.err (!%p343_p1)
}
 0x235   :  { %256 = dma.vmem_to_hbm [thread:$0]  %s251_s8, 512, %s424_s4, [#allocation4], %s352_s25, %s352_s25, %s353_s26  }
 0x236   :  { %349 = dma.done.wait [#allocation4], 512  }
 0x237   :  { %350 = vsyncadd [#allocation4], 4294966784 }
 0x238   :  { %260 = vsyncpa [#allocation3], 1 }
 0x239   :  { %261 = vsyncpa [#allocation4], 1 }

</bundles_post_ra>
